<compile_context>
chip_gen: v5e
topology: v5e:2x2
jax: 0.10.0
libtpu: 0.0.40
codegen_flags: <defaults>
</compile_context>

<pallas_src>
import math

import jax
import jax.numpy as jnp
from jax.experimental import pallas as pl
from jax.experimental.pallas import tpu as pltpu


EDGE_TYPES = ("Demand", "Supply", "CompanyFlow", "PositionFlow")
_PALLAS_GATHER_MIN_ROWS = 512      # below this, jnp.take beats a pallas_call


def _round_up(x, m):
    return ((x + m - 1) // m) * m


def _pad2(a, rows, cols):
    return jnp.pad(a, ((0, rows - a.shape[0]), (0, cols - a.shape[1])))


def _pad_dim(n):
    """Node-count padding granularity: lane-dense 128 minimum, coarser for big graphs
    so 256/512-row M tiles divide evenly."""
    if n <= 128:
        return 128
    if n <= 1024:
        return _round_up(n, 256)
    return _round_up(n, 512)


def _tpu_vmem_capacity():
    cap = 64 * 1024 * 1024            # conservative default (v7x per-TC VMEM)
    try:
        info = pltpu.get_tpu_info()
        cap = int(getattr(info, "vmem_capacity_bytes", cap))
    except Exception:
        pass
    return max(cap, 16 * 1024 * 1024)


_VMEM_CAP = _tpu_vmem_capacity()
_VMEM_LIMIT_BYTES = int(_VMEM_CAP * 0.75)   # scoped limit handed to Mosaic
_TILE_BUDGET_BYTES = int(_VMEM_CAP * 0.60)  # what the tile picker may spend


def _pick_tiles(n_dst, ns1, ns2, dp, budget=None):
    """Pick (tm, tk) for the K-tiled dst conv.

    tk must divide both relations' (128-padded) src dims -> zero K-padding waste.
    tm is clamped to >= 128, preferring a tile that leaves an M-grid of >= 2 steps
    (keeps both v7x TensorCores busy on the "parallel" axis).
    """
    if budget is None:
        budget = _TILE_BUDGET_BYTES

    tk = 128
    for cand in (1024, 512, 256):
        if ns1 % cand == 0 and ns2 % cand == 0:
            tk = cand
            break

    def fits(tm_, tk_):
        b = (2 * tm_ * tk_ * 2        # A tiles, bf16, double-buffered
             + 2 * tk_ * dp * 2       # HW tiles, bf16, double-buffered
             + 2 * tm_ * dp * 4       # output tile, f32, double-buffered
             + 2 * tm_ * dp * 4       # two f32 accumulators (single-buffered each)
             + 2 * 2 * dp * 4)        # two biases, double-buffered
        return b <= budget

    tm_cands = [t for t in (512, 256, 128) if n_dst % t == 0]
    tm = None
    for t in tm_cands:                # prefer >= 2 M-grid steps (v7x megacore)
        if n_dst // t >= 2 and fits(t, tk):
            tm = t
            break
    if tm is None:
        for t in tm_cands:
            if fits(t, tk):
                tm = t
                break
    if tm is None:
        tm = 128
        while not fits(tm, tk) and tk > 128:
            tk //= 2
    return tm, tk


# ----------------------------------------------------------------------------
# Kernel 1: fused, K-tiled HeteroGraphConv step for one destination node type.
#   Inputs: A_cat  = [inv_in1*A1 | inv_in2*A2]           (n_dst, K1+K2) bf16
#           HW_cat = [HW1; HW2],  HW_r = (inv_out_r*H_src_r) @ W_r   (K1+K2, Dp) bf16
#   Per dst tile: acc_r = sum_k A_r_tile @ HW_r_tile  (f32 accumulate, MXU)
#   Epilogue:     out = 0.5 * (relu(acc1 + b1) + relu(acc2 + b2))
# ----------------------------------------------------------------------------
def _make_dst_conv_kernel(nk1):
    def kernel(a_ref, hw_ref, b1_ref, b2_ref, o_ref, acc1_ref, acc2_ref):
        k = pl.program_id(1)

        @pl.when(k == 0)
        def _():
            acc1_ref[...] = jnp.zeros_like(acc1_ref)
            acc2_ref[...] = jnp.zeros_like(acc2_ref)

        part = jnp.dot(a_ref[...], hw_ref[...], preferred_element_type=jnp.float32)

        @pl.when(k < nk1)
        def _():
            acc1_ref[...] += part

        @pl.when(k >= nk1)
        def _():
            acc2_ref[...] += part

        @pl.when(k == pl.num_programs(1) - 1)
        def _():
            r1 = jnp.maximum(acc1_ref[...] + b1_ref[...], 0.0)
            r2 = jnp.maximum(acc2_ref[...] + b2_ref[...], 0.0)
            o_ref[...] = (0.5 * (r1 + r2)).astype(o_ref.dtype)

    return kernel


def hetero_dst_conv(a_cat, hw_cat, b1, b2, *, nk1, tm, tk):
    n_dst, k_total = a_cat.shape
    dp = hw_cat.shape[1]
    grid = (n_dst // tm, k_total // tk)
    return pl.pallas_call(
        _make_dst_conv_kernel(nk1),
        out_shape=jax.ShapeDtypeStruct((n_dst, dp), jnp.float32),
        grid_spec=pltpu.PrefetchScalarGridSpec(
            num_scalar_prefetch=0,
            grid=grid,
            in_specs=[
                pl.BlockSpec((tm, tk), lambda i, k: (i, k)),   # A row/K tile (bf16)
                pl.BlockSpec((tk, dp), lambda i, k: (k, 0)),   # HW K tile (bf16)
                pl.BlockSpec((1, dp), lambda i, k: (0, 0)),    # bias rel-1 (f32)
                pl.BlockSpec((1, dp), lambda i, k: (0, 0)),    # bias rel-2 (f32)
            ],
            out_specs=pl.BlockSpec((tm, dp), lambda i, k: (i, 0)),
            scratch_shapes=[pltpu.VMEM((tm, dp), jnp.float32),
                            pltpu.VMEM((tm, dp), jnp.float32)],
        ),
        compiler_params=pltpu.CompilerParams(
            dimension_semantics=("parallel", "arbitrary"),
            vmem_limit_bytes=_VMEM_LIMIT_BYTES),
    )(a_cat, hw_cat, b1, b2)


def _concat_rel(rel1, rel2, tk):
    """Concatenate the two relations' (A, HW) along K; tk divides both by
    construction, so the _pad2 calls are normally no-ops."""
    a1, hw1 = rel1
    a2, hw2 = rel2
    kp1 = _round_up(a1.shape[1], tk)
    kp2 = _round_up(a2.shape[1], tk)
    a_cat = jnp.concatenate(
        [_pad2(a1, a1.shape[0], kp1), _pad2(a2, a2.shape[0], kp2)], axis=1)
    hw_cat = jnp.concatenate(
        [_pad2(hw1, kp1, hw1.shape[1]), _pad2(hw2, kp2, hw2.shape[1])], axis=0)
    return a_cat, hw_cat, kp1 // tk


# ----------------------------------------------------------------------------
# Kernel 2: batched row gather  out[g*G + j] = table[idx[g*G + j]]
#   Table stays in HBM (memory_space=pl.ANY); indices are scalar-prefetched into
#   SMEM; each grid step DMAs G lane-dense (1, Dp) rows straight into the output
#   block (no VMEM bounce).  Index reads are hoisted before any .wait().
# ----------------------------------------------------------------------------
def _make_gather_kernel(G):
    def kernel(idx_ref, table_ref, o_ref, sem):
        base = pl.program_id(0) * G
        rows = [idx_ref[base + j] for j in range(G)]    # hoist SMEM reads
        for j in range(G):
            pltpu.make_async_copy(
                table_ref.at[pl.ds(rows[j], 1), :],
                o_ref.at[pl.ds(j, 1), :],
                sem.at[j]).start()
        for j in range(G):
            pltpu.make_async_copy(
                table_ref.at[pl.ds(rows[j], 1), :],
                o_ref.at[pl.ds(j, 1), :],
                sem.at[j]).wait()
    return kernel


def gather_rows(table, flat_idx, *, G=32):
    """table: (R, Dp) f32 in HBM; flat_idx: (m,) int32. Returns (m, Dp)."""
    r, dp = table.shape
    m = flat_idx.shape[0]
    m_pad = _round_up(max(m, 1), G)
    # Clip guards against an OOB DMA (hardware fault). TODO(synk): surface a real
    # validation error for out-of-range (t_e, node) indices instead of clipping.
    idx = jnp.clip(flat_idx.astype(jnp.int32), 0, r - 1)
    idx = jnp.pad(idx, (0, m_pad - m))
    out = pl.pallas_call(
        _make_gather_kernel(G),
        out_shape=jax.ShapeDtypeStruct((m_pad, dp), table.dtype),
        grid_spec=pltpu.PrefetchScalarGridSpec(
            num_scalar_prefetch=1,
            grid=(m_pad // G,),
            in_specs=[pl.BlockSpec(memory_space=pl.ANY)],     # table stays in HBM
            out_specs=pl.BlockSpec((G, dp), lambda g, idx: (g, 0)),
            scratch_shapes=[pltpu.SemaphoreType.DMA((G,))],
        ),
        compiler_params=pltpu.CompilerParams(
            dimension_semantics=("parallel",),
            vmem_limit_bytes=_VMEM_LIMIT_BYTES),
    )(idx, table)
    return out[:m]


# ----------------------------------------------------------------------------
# DyComPosHGNN (JAX / Pallas version)
# ----------------------------------------------------------------------------
class DyComPosHGNNPallas:
    def __init__(self, hgs, companies_num, positions_num, com_pos_embed_dim, key):
        self.n = len(hgs)
        self.Nc, self.Np, self.D = companies_num, positions_num, com_pos_embed_dim
        self.Dp = _round_up(com_pos_embed_dim, 128)
        self.Ncp = _pad_dim(companies_num)
        self.Npp = _pad_dim(positions_num)

        keys = jax.random.split(key, 3)
        bound = math.sqrt(6.0 / (2 * com_pos_embed_dim))      # xavier_uniform
        wk = jax.random.split(keys[0], 4)
        self.W, self.Wp, self.b, self.bp = {}, {}, {}, {}
        for i, et in enumerate(EDGE_TYPES):
            w = jax.random.uniform(wk[i], (self.D, self.D), jnp.float32, -bound, bound)
            self.W[et] = w
            self.Wp[et] = _pad2(w, self.Dp, self.Dp)
            self.b[et] = jnp.zeros((1, self.D), jnp.float32)   # DGL GraphConv bias init
            self.bp[et] = jnp.zeros((1, self.Dp), jnp.float32)

        # nn.Embedding default init = N(0, 1)
        self.init_com_emb = jax.random.normal(keys[1], (self.Nc, self.D), jnp.float32)
        self.init_pos_emb = jax.random.normal(keys[2], (self.Np, self.D), jnp.float32)

        com = _pad2(self.init_com_emb, self.Ncp, self.Dp)
        pos = _pad2(self.init_pos_emb, self.Npp, self.Dp)

        shapes = {"Demand": (self.Npp, self.Ncp), "Supply": (self.Ncp, self.Npp),
                  "CompanyFlow": (self.Ncp, self.Ncp), "PositionFlow": (self.Npp, self.Npp)}
        src_emb = {"Demand": "com", "CompanyFlow": "com", "Supply": "pos", "PositionFlow": "pos"}

        tm_c, tk_c = _pick_tiles(self.Ncp, self.Ncp, self.Npp, self.Dp)  # Company dst
        tm_p, tk_p = _pick_tiles(self.Npp, self.Npp, self.Ncp, self.Dp)  # Position dst

        com_list, pos_list = [], []
        for hg in hgs:
            h_src = {"com": com, "pos": pos}
            rel = {}
            for et in EDGE_TYPES:
                a = _pad2(hg[et].astype(jnp.float32), *shapes[et])
                # EdgeWeightNorm(norm='both') as separate row/col degree scales.
                in_deg = jnp.sum(a, axis=1, keepdims=True)       # weighted in-degree (dst)
                out_deg = jnp.sum(a, axis=0)                     # weighted out-degree (src)
                inv_in = jax.lax.rsqrt(jnp.maximum(in_deg, 1e-12))
                inv_out = jax.lax.rsqrt(jnp.maximum(out_deg, 1e-12))
                # Fold the dst-side norm into A (row-wise), and the src-side norm
                # into the tiny HW = (inv_out*H_src) @ W pre-product (f32, wrapper-side).
                a_scaled = (inv_in * a).astype(jnp.bfloat16)
                hw = ((inv_out[:, None] * h_src[src_emb[et]]) @ self.Wp[et]).astype(jnp.bfloat16)
                rel[et] = (a_scaled, hw)

            # Company dst <- CompanyFlow (Company->Company) + Supply (Position->Company)
            a_c, hw_c, nk1_c = _concat_rel(rel["CompanyFlow"], rel["Supply"], tk_c)
            new_com = hetero_dst_conv(a_c, hw_c,
                                      self.bp["CompanyFlow"], self.bp["Supply"],
                                      nk1=nk1_c, tm=tm_c, tk=tk_c)
            # Position dst <- PositionFlow (Position->Position) + Demand (Company->Position)
            a_p, hw_p, nk1_p = _concat_rel(rel["PositionFlow"], rel["Demand"], tk_p)
            new_pos = hetero_dst_conv(a_p, hw_p,
                                      self.bp["PositionFlow"], self.bp["Demand"],
                                      nk1=nk1_p, tm=tm_p, tk=tk_p)
            com, pos = new_com, new_pos
            com_list.append(com)
            pos_list.append(pos)

        self.com_embs = jnp.stack(com_list)   # (T, Ncp, Dp) padded, f32
        self.pos_embs = jnp.stack(pos_list)   # (T, Npp, Dp) padded, f32

    def forward(self, c, p, t_s, t_e):
        del t_s  # unused in the reference forward as well
        B, L = c.shape
        m = B * L
        flat_c = (t_e[:, None].astype(jnp.int32) * self.Ncp + c.astype(jnp.int32)).reshape(-1)
        flat_p = (t_e[:, None].astype(jnp.int32) * self.Npp + p.astype(jnp.int32)).reshape(-1)
        com_tbl = self.com_embs.reshape(self.n * self.Ncp, self.Dp)
        pos_tbl = self.pos_embs.reshape(self.n * self.Npp, self.Dp)
        if m >= _PALLAS_GATHER_MIN_ROWS:
            com = gather_rows(com_tbl, flat_c)
            pos = gather_rows(pos_tbl, flat_p)
        else:
            # Tiny batches: pallas_call fixed cost exceeds an XLA gather.
            com = jnp.take(com_tbl, flat_c, axis=0)
            pos = jnp.take(pos_tbl, flat_p, axis=0)
        com = com.reshape(B, L, self.Dp)[:, :, :self.D]
        pos = pos.reshape(B, L, self.Dp)[:, :, :self.D]
        return com, pos


# ----------------------------------------------------------------------------
# Pure-JAX f32 reference (for correctness check)
# ----------------------------------------------------------------------------
def _ref_norm(a):
    in_deg = jnp.maximum(a.sum(axis=1, keepdims=True), 1e-12)
    out_deg = jnp.maximum(a.sum(axis=0, keepdims=True), 1e-12)
    return a / (jnp.sqrt(in_deg) * jnp.sqrt(out_deg))


def _ref_forward(model, hgs, c, p, t_e):
    com, pos = model.init_com_emb, model.init_pos_emb
    com_list, pos_list = [], []
    for hg in hgs:
        a = {et: _ref_norm(hg[et]) for et in EDGE_TYPES}
        rel = lambda A, H, et: jnp.maximum(A @ H @ model.W[et] + model.b[et], 0.0)
        new_com = 0.5 * (rel(a["CompanyFlow"], com, "CompanyFlow") + rel(a["Supply"], pos, "Supply"))
        new_pos = 0.5 * (rel(a["PositionFlow"], pos, "PositionFlow") + rel(a["Demand"], com, "Demand"))
        com, pos = new_com, new_pos
        com_list.append(com)
        pos_list.append(pos)
    com_embs = jnp.stack(com_list)
    pos_embs = jnp.stack(pos_list)
    return com_embs[t_e[:, None], c], pos_embs[t_e[:, None], p]


if __name__ == "__main__":
    key = jax.random.PRNGKey(0)
    T, Nc, Np, D = 3, 16, 8, 32       # timesteps, companies, positions, embed dim
    B, L = 2, 4                        # batch, career-sequence length

    k_graph, k_model, k_idx = jax.random.split(key, 3)

    def make_adj(k, n_dst, n_src):
        k1, k2 = jax.random.split(k)
        w = jax.random.uniform(k1, (n_dst, n_src), jnp.float32, 0.1, 1.0)
        mask = jax.random.bernoulli(k2, 0.6, (n_dst, n_src)).astype(jnp.float32)
        return w * mask

    shapes = {"Demand": (Np, Nc), "Supply": (Nc, Np),
              "CompanyFlow": (Nc, Nc), "PositionFlow": (Np, Np)}
    hgs = []
    gkeys = jax.random.split(k_graph, T)
    for t in range(T):
        ekeys = jax.random.split(gkeys[t], 4)
        hgs.append({et: make_adj(ekeys[i], *shapes[et]) for i, et in enumerate(EDGE_TYPES)})

    model = DyComPosHGNNPallas(hgs, Nc, Np, D, k_model)

    ik = jax.random.split(k_idx, 4)
    c = jax.random.randint(ik[0], (B, L), 0, Nc, dtype=jnp.int32)
    p = jax.random.randint(ik[1], (B, L), 0, Np, dtype=jnp.int32)
    t_e = jax.random.randint(ik[2], (B,), 0, T, dtype=jnp.int32)
    t_s = jnp.zeros((B,), jnp.int32)

    com_out, pos_out = model.forward(c, p, t_s, t_e)
    com_out, pos_out = jax.block_until_ready((com_out, pos_out))

    ref_com, ref_pos = _ref_forward(model, hgs, c, p, t_e)
    assert com_out.shape == (B, L, D) and pos_out.shape == (B, L, D)
    # bf16 MXU inputs (A, HW) vs f32 reference -> slightly looser tolerance
    assert jnp.allclose(com_out, ref_com, rtol=5e-2, atol=5e-2)
    assert jnp.allclose(pos_out, ref_pos, rtol=5e-2, atol=5e-2)

    # Exercise the Pallas gather kernel directly (forward() uses jnp.take for tiny m).
    test_idx = jax.random.randint(ik[3], (64,), 0, model.n * model.Ncp, dtype=jnp.int32)
    tbl = model.com_embs.reshape(model.n * model.Ncp, model.Dp)
    gat = jax.block_until_ready(gather_rows(tbl, test_idx))
    assert jnp.allclose(gat, jnp.take(tbl, test_idx, axis=0))

    print("KERNEL_OK")
</pallas_src>

<mosaic_0001>
module attributes {stable_mosaic.version = 11 : i64} {
  func.func @kernel(%arg0: i32, %arg1: i32, %arg2: memref<128x128xbf16, #tpu.memory_space<vmem>>, %arg3: memref<128x128xbf16, #tpu.memory_space<vmem>>, %arg4: memref<1x128xf32, #tpu.memory_space<vmem>>, %arg5: memref<1x128xf32, #tpu.memory_space<vmem>>, %arg6: memref<128x128xf32, #tpu.memory_space<vmem>>, %arg7: memref<128x128xf32, #tpu.memory_space<vmem>>, %arg8: memref<128x128xf32, #tpu.memory_space<vmem>>) attributes {dimension_semantics = [#tpu.dimension_semantics<parallel>, #tpu.dimension_semantics<arbitrary>], iteration_bounds = array<i64: 1, 2>, scalar_prefetch = 0 : i64, scratch_operands = 2 : i64, tpu.core_type = #tpu.core_type<tc>, window_params = [{transform_indices = @transform_0, window_bounds = array<i64: 128, 128>}, {transform_indices = @transform_1, window_bounds = array<i64: 128, 128>}, {pipeline_mode = #tpu.pipeline_mode<synchronous>, transform_indices = @transform_2, window_bounds = array<i64: 1, 128>}, {pipeline_mode = #tpu.pipeline_mode<synchronous>, transform_indices = @transform_3, window_bounds = array<i64: 1, 128>}, {transform_indices = @transform_4, window_bounds = array<i64: 128, 128>}]} {
    %c0_i32 = arith.constant 0 : i32
    %0 = arith.cmpi eq, %arg1, %c0_i32 : i32
    %1 = arith.extui %0 : i1 to i32
    %c0_i32_0 = arith.constant 0 : i32
    %2 = arith.cmpi ne, %1, %c0_i32_0 : i32
    scf.if %2 {
      %cst_9 = arith.constant 0.000000e+00 : f32
      %15 = vector.broadcast %cst_9 : f32 to vector<128x128xf32>
      %c0_10 = arith.constant 0 : index
      %c0_11 = arith.constant 0 : index
      %16 = vector.load %arg7[%c0_10, %c0_11] : memref<128x128xf32, #tpu.memory_space<vmem>>, vector<128x128xf32>
      tpu.vector_store %arg7[%c0_10, %c0_11], %15 {strides = array<i32>} : memref<128x128xf32, #tpu.memory_space<vmem>>, vector<128x128xf32>,
      %cst_12 = arith.constant 0.000000e+00 : f32
      %17 = vector.broadcast %cst_12 : f32 to vector<128x128xf32>
      %c0_13 = arith.constant 0 : index
      %c0_14 = arith.constant 0 : index
      %18 = vector.load %arg8[%c0_13, %c0_14] : memref<128x128xf32, #tpu.memory_space<vmem>>, vector<128x128xf32>
      tpu.vector_store %arg8[%c0_13, %c0_14], %17 {strides = array<i32>} : memref<128x128xf32, #tpu.memory_space<vmem>>, vector<128x128xf32>,
    } else {
    }
    %c0 = arith.constant 0 : index
    %c0_1 = arith.constant 0 : index
    %3 = vector.load %arg2[%c0, %c0_1] : memref<128x128xbf16, #tpu.memory_space<vmem>>, vector<128x128xbf16>
    %c0_2 = arith.constant 0 : index
    %c0_3 = arith.constant 0 : index
    %4 = vector.load %arg3[%c0_2, %c0_3] : memref<128x128xbf16, #tpu.memory_space<vmem>>, vector<128x128xbf16>
    %cst = arith.constant dense<0.000000e+00> : vector<128x128xf32>
    %5 = tpu.matmul %3, %4, %cst {dimension_numbers = #tpu.dot_dimension_numbers<[1], [0], [0], [1], [0, 0, 1, 1], [], []>} : vector<128x128xbf16>, vector<128x128xbf16>, vector<128x128xf32> -> vector<128x128xf32>
    %c1_i32 = arith.constant 1 : i32
    %6 = arith.cmpi slt, %arg1, %c1_i32 : i32
    %7 = arith.extui %6 : i1 to i32
    %c0_i32_4 = arith.constant 0 : i32
    %8 = arith.cmpi ne, %7, %c0_i32_4 : i32
    scf.if %8 {
      %c0_9 = arith.constant 0 : index
      %c0_10 = arith.constant 0 : index
      %15 = vector.load %arg7[%c0_9, %c0_10] : memref<128x128xf32, #tpu.memory_space<vmem>>, vector<128x128xf32>
      %16 = arith.addf %15, %5 : vector<128x128xf32>
      %c0_11 = arith.constant 0 : index
      %c0_12 = arith.constant 0 : index
      %17 = vector.load %arg7[%c0_11, %c0_12] : memref<128x128xf32, #tpu.memory_space<vmem>>, vector<128x128xf32>
      tpu.vector_store %arg7[%c0_11, %c0_12], %16 {strides = array<i32>} : memref<128x128xf32, #tpu.memory_space<vmem>>, vector<128x128xf32>,
    } else {
    }
    %c1_i32_5 = arith.constant 1 : i32
    %9 = arith.cmpi sge, %arg1, %c1_i32_5 : i32
    %10 = arith.extui %9 : i1 to i32
    %c0_i32_6 = arith.constant 0 : i32
    %11 = arith.cmpi ne, %10, %c0_i32_6 : i32
    scf.if %11 {
      %c0_9 = arith.constant 0 : index
      %c0_10 = arith.constant 0 : index
      %15 = vector.load %arg8[%c0_9, %c0_10] : memref<128x128xf32, #tpu.memory_space<vmem>>, vector<128x128xf32>
      %16 = arith.addf %15, %5 : vector<128x128xf32>
      %c0_11 = arith.constant 0 : index
      %c0_12 = arith.constant 0 : index
      %17 = vector.load %arg8[%c0_11, %c0_12] : memref<128x128xf32, #tpu.memory_space<vmem>>, vector<128x128xf32>
      tpu.vector_store %arg8[%c0_11, %c0_12], %16 {strides = array<i32>} : memref<128x128xf32, #tpu.memory_space<vmem>>, vector<128x128xf32>,
    } else {
    }
    %c1_i32_7 = arith.constant 1 : i32
    %12 = arith.cmpi eq, %arg1, %c1_i32_7 : i32
    %13 = arith.extui %12 : i1 to i32
    %c0_i32_8 = arith.constant 0 : i32
    %14 = arith.cmpi ne, %13, %c0_i32_8 : i32
    scf.if %14 {
      %c0_9 = arith.constant 0 : index
      %c0_10 = arith.constant 0 : index
      %15 = vector.load %arg7[%c0_9, %c0_10] : memref<128x128xf32, #tpu.memory_space<vmem>>, vector<128x128xf32>
      %c0_11 = arith.constant 0 : index
      %c0_12 = arith.constant 0 : index
      %16 = vector.load %arg4[%c0_11, %c0_12] : memref<1x128xf32, #tpu.memory_space<vmem>>, vector<1x128xf32>
      %17 = vector.broadcast %16 : vector<1x128xf32> to vector<128x128xf32>
      %18 = arith.addf %15, %17 : vector<128x128xf32>
      %cst_13 = arith.constant 0.000000e+00 : f32
      %19 = vector.broadcast %cst_13 : f32 to vector<128x128xf32>
      %20 = arith.maximumf %18, %19 : vector<128x128xf32>
      %c0_14 = arith.constant 0 : index
      %c0_15 = arith.constant 0 : index
      %21 = vector.load %arg8[%c0_14, %c0_15] : memref<128x128xf32, #tpu.memory_space<vmem>>, vector<128x128xf32>
      %c0_16 = arith.constant 0 : index
      %c0_17 = arith.constant 0 : index
      %22 = vector.load %arg5[%c0_16, %c0_17] : memref<1x128xf32, #tpu.memory_space<vmem>>, vector<1x128xf32>
      %23 = vector.broadcast %22 : vector<1x128xf32> to vector<128x128xf32>
      %24 = arith.addf %21, %23 : vector<128x128xf32>
      %cst_18 = arith.constant 0.000000e+00 : f32
      %25 = vector.broadcast %cst_18 : f32 to vector<128x128xf32>
      %26 = arith.maximumf %24, %25 : vector<128x128xf32>
      %27 = arith.addf %20, %26 : vector<128x128xf32>
      %cst_19 = arith.constant 5.000000e-01 : f32
      %28 = vector.broadcast %cst_19 : f32 to vector<128x128xf32>
      %29 = arith.mulf %28, %27 : vector<128x128xf32>
      %c0_20 = arith.constant 0 : index
      %c0_21 = arith.constant 0 : index
      %30 = vector.load %arg6[%c0_20, %c0_21] : memref<128x128xf32, #tpu.memory_space<vmem>>, vector<128x128xf32>
      tpu.vector_store %arg6[%c0_20, %c0_21], %29 {strides = array<i32>} : memref<128x128xf32, #tpu.memory_space<vmem>>, vector<128x128xf32>,
    } else {
    }
    return
  }
  func.func @transform_0(%arg0: i32, %arg1: i32) -> (i32, i32) {
    %c0_i32 = arith.constant 0 : i32
    return %arg0, %arg1 : i32, i32
  }
  func.func @transform_1(%arg0: i32, %arg1: i32) -> (i32, i32) {
    %c0_i32 = arith.constant 0 : i32
    %c0_i32_0 = arith.constant 0 : i32
    return %arg1, %c0_i32 : i32, i32
  }
  func.func @transform_2(%arg0: i32, %arg1: i32) -> (i32, i32) {
    %c0_i32 = arith.constant 0 : i32
    %c0_i32_0 = arith.constant 0 : i32
    %c0_i32_1 = arith.constant 0 : i32
    return %c0_i32, %c0_i32_0 : i32, i32
  }
  func.func @transform_3(%arg0: i32, %arg1: i32) -> (i32, i32) {
    %c0_i32 = arith.constant 0 : i32
    %c0_i32_0 = arith.constant 0 : i32
    %c0_i32_1 = arith.constant 0 : i32
    return %c0_i32, %c0_i32_0 : i32, i32
  }
  func.func @transform_4(%arg0: i32, %arg1: i32) -> (i32, i32) {
    %c0_i32 = arith.constant 0 : i32
    %c0_i32_0 = arith.constant 0 : i32
    return %arg0, %c0_i32 : i32, i32
  }
}

</mosaic_0001>

<bundles_post_ra>
// kernel: tpu_custom_call.1
= control target key start
LH: loop header
LB: loop body
LE: loop exit
PB: predicated region body
PF: predicated region fallthrough
CT: control target
= control target key end

     0   :  { %9 = vsyncpa [#allocation5], 0  ;;  %s1465_s0 = inlined_call_operand.hbm [shape: bf16[128,256], index: 0, kind: input, shape index: {}]   ;;  %s1466_s1 = inlined_call_operand.hbm [shape: bf16[256,128], index: 1, kind: input, shape index: {}]   ;;  %s1467_s2 = inlined_call_operand.vmem [shape: f32[1,128], index: 2, kind: input, shape index: {}]   ;;  %s1468_s3 = inlined_call_operand.vmem [shape: f32[1,128], index: 3, kind: input, shape index: {}]   ;;  %s1469_s4 = inlined_call_operand.hbm [shape: f32[128,128], index: 4, kind: output, shape index: {}]  }
   0x1   :  { %11 = vsyncpa [#allocation5 + $0x1], 0 }
   0x2   :  { %12 = vsyncpa [#allocation8], 0 }
   0x3   :  { %14 = vsyncpa [#allocation8 + $0x1], 0 }
   0x4   :  { %15 = vsyncpa [#allocation6], 0  ;;  %s1224_s15 = smov 0   ;;  %s1226_s16 = smov 0  }
   0x5   :  { %s1228_s17 = smov 0   ;;  %s1230_s18 = smov 0  }
   0x6   :  { %s1232_s19 = smov 0   ;;  %s1234_s20 = smov 0  }
   0x7 LB: > { %s1470_s21 = sadd.s32 4294967295, %s1190_s20   ;;  %s30_s22 = sadd.s32 1, %s1186_s19  ;;  %s1190_s20 = sphi %s1234_s20, %s21_s20   ;;  %s1186_s19 = sphi %s1232_s19, %s1479_s19   ;;  %s1182_s18 = sphi %s1230_s18, %s1478_s18   ;;  %s1178_s17 = sphi %s1228_s17, %s1477_s17   ;;  %s1174_s16 = sphi %s1226_s16, %s1476_s16   ;;  %s1170_s15 = sphi %s1224_s15, %s1475_s15  }
   0x8   : > { %p31_p0 = scmp.ge.s32.totalorder %s30_s22, 2  ;;  %s42_s23 = sadd.s32 1, %s1178_s17 }
   0x9   : > { %p49_p1 = scmp.ne.s32.totalorder %s1178_s17, %s1174_s16  ;;  %p50_p2 = scmp.eq.s32.totalorder %s1190_s20, 0 }
   0xa   : > { %s1481_s22 = smov (%p31_p0, %s30_s22), 0  ;;  %p55_p4 = scmp.ne.s32.totalorder %s1174_s16, %s1170_s15 }
   0xb   : > { %p1260_p3 = por %p50_p2, %p49_p1  ;;  %s38_s25 = ssub.s32 %s1186_s19, %s1481_s22 }
   0xc   : > { %p56_p5 = scmp.eq.s32.totalorder %s1470_s21, 0  ;;  %p40_p6 = scmp.eq.s32.totalorder %s38_s25, 0 }
   0xd   : > { %p984_p8 = scmp.lt.s32.totalorder %s1190_s20, 2  ;;  %s1278_s28 = sand.u32 1, %s1178_s17  }
   0xe   : > { %p1269_p7 = por %p56_p5, %p55_p4  ;;  %s849_s29 = sshll.u32 %s1186_s19, 2 }
   0xf   : > { %s1275_s27 = scalar_select %p40_p6, %s1178_s17, %s42_s23  }
  0x10   : > { %s848_s30 = sshll.u32 %s1278_s28, 6  ;;  %s190_s7 = scalar_lea.hbm %s1465_s0, %s849_s29 }
  0x11   : > { %s191_s8 = sshll.u32 %s190_s7, 4  ;;  %s183_s9 = scalar_lea.vmem [#allocation4], %s848_s30  ;;  %s192_s8 = int_to_ptr.hbm [resolvable:$true] %s191_s8 }
  0x12   : > { %s193_s10 = sshll.u32 %s183_s9, 4  ;;  %p1287_p9 = pnand %p984_p8, %p1260_p3  ;;  %s194_s10 = int_to_ptr.vmem [resolvable:$true] %s193_s10 }
  0x13   : > { %p853_p10 = scmp.ge.s32.totalorder %s1190_s20, 1  ;;  %s180_s12 = scalar_lea.sflag [#allocation5], %s1278_s28 }
  0x14   : > { %s1192_s13 = smov 128   ;;  %s1193_s14 = smov 64  }
  0x15   : > { %s1194_s15 = smov 4   ;;  %p223_p11 = scmp.lt.s32.totalorder %s1190_s20, 3 }
  0x16   : > { %980 = dma.hbm_to_vmem [thread:$0]  (!%p1287_p9), %s192_s8, 1024, %s194_s10, %s180_s12, %s1192_s13, %s1193_s14, %s1194_s15  }
  0x17   : > { %s928_s23 = sshll.u32 %s1186_s19, 6  ;;  %p224_p12 = pnand %p853_p10, %p223_p11 }
  0x18   : > { %s212_s24 = scalar_lea.hbm %s1466_s1, %s928_s23  ;;  %s207_s6 = scalar_lea.vmem [#allocation7], %s848_s30 }
  0x19   : > { %s213_s5 = sshll.u32 %s212_s24, 4  ;;  %s215_s7 = sshll.u32 %s207_s6, 4  ;;  %s214_s5 = int_to_ptr.hbm [resolvable:$true] %s213_s5  ;;  %s216_s7 = int_to_ptr.vmem [resolvable:$true] %s215_s7 }
  0x1a   : > { %s204_s9 = scalar_lea.sflag [#allocation8], %s1278_s28  ;;  %227 = sbr.rel (%p224_p12) target bundleno = 354 (0x162), region = 36 }
  0x1b   : > { %983 = dma.hbm_to_vmem [thread:$0]  (!%p1287_p9), %s214_s5, 1024, %s216_s7, %s204_s9, %s1193_s14, %s1193_s14, %s1194_s15  }
  0x1c   : > { %s229_s21 = sand.u32 (!%p224_p12), 1, %s1174_s16  }
  0x1d   : > { %s854_s8 = sshll.u32 (!%p224_p12), %s229_s21, 6  ;;  %s230_s10 = scalar_lea.sflag (!%p224_p12), [#allocation5], %s229_s21 }
  0x1e   : > { %s1304_s12 = scalar_lea.vmem (!%p224_p12), [#allocation4], %s854_s8 }
  0x1f   : > { %1157 = dma.done.wait (%p1269_p7), %s230_s10, 1024  }
  0x20   : > { %1159 = vsyncadd (%p1269_p7), %s230_s10, 4294966272  ;;  %s240_s30 = scalar_lea.sflag [#allocation8], %s229_s21  ;;  %s1310_s13 = scalar_lea.vmem [#allocation7], %s854_s8 }
  0x21   : > { %1161 = dma.done.wait (%p1269_p7), %s240_s30, 1024  }
  0x22   : > { %1163 = vsyncadd (%p1269_p7), %s240_s30, 4294966272  ;;  %p856_p13 = scmp.ne.s32.totalorder %s1182_s18, 0 }
  0x24   : > { %275 = sbr.rel (%p856_p13) target bundleno = 74 (0x4a), region = 48 }
  0x29   : > { %v1195_v0 = vmov 0.0  }
  0x2a   : > { %276 = vst [vmem:[#allocation2 + $0x30] sm:$0xff] %v1195_v0 }
  0x2b   : > { %277 = vst [vmem:[#allocation2] sm:$0xff] %v1195_v0 }
  0x2c   : > { %278 = vst [vmem:[#allocation2 + $0x58] sm:$0xff] %v1195_v0 }
  0x2d   : > { %279 = vst [vmem:[#allocation2 + $0x18] sm:$0xff] %v1195_v0 }
  0x2e   : > { %280 = vst [vmem:[#allocation2 + $0x50] sm:$0xff] %v1195_v0 }
  0x2f   : > { %281 = vst [vmem:[#allocation2 + $0x68] sm:$0xff] %v1195_v0 }
  0x30   : > { %282 = vst [vmem:[#allocation2 + $0x8] sm:$0xff] %v1195_v0 }
  0x31   : > { %283 = vst [vmem:[#allocation2 + $0x48] sm:$0xff] %v1195_v0 }
  0x32   : > { %284 = vst [vmem:[#allocation2 + $0x40] sm:$0xff] %v1195_v0 }
  0x33   : > { %285 = vst [vmem:[#allocation2 + $0x20] sm:$0xff] %v1195_v0 }
  0x34   : > { %286 = vst [vmem:[#allocation2 + $0x10] sm:$0xff] %v1195_v0 }
  0x35   : > { %287 = vst [vmem:[#allocation2 + $0x38] sm:$0xff] %v1195_v0 }
  0x36   : > { %288 = vst [vmem:[#allocation2 + $0x60] sm:$0xff] %v1195_v0 }
  0x37   : > { %289 = vst [vmem:[#allocation2 + $0x70] sm:$0xff] %v1195_v0 }
  0x38   : > { %290 = vst [vmem:[#allocation2 + $0x78] sm:$0xff] %v1195_v0 }
  0x39   : > { %291 = vst [vmem:[#allocation2 + $0x28] sm:$0xff] %v1195_v0 }
  0x3a   : > { %292 = vst [vmem:[#allocation3 + $0x28] sm:$0xff] %v1195_v0 }
  0x3b   : > { %293 = vst [vmem:[#allocation3 + $0x68] sm:$0xff] %v1195_v0 }
  0x3c   : > { %294 = vst [vmem:[#allocation3 + $0x10] sm:$0xff] %v1195_v0 }
  0x3d   : > { %295 = vst [vmem:[#allocation3 + $0x40] sm:$0xff] %v1195_v0 }
  0x3e   : > { %296 = vst [vmem:[#allocation3 + $0x48] sm:$0xff] %v1195_v0 }
  0x3f   : > { %297 = vst [vmem:[#allocation3 + $0x30] sm:$0xff] %v1195_v0 }
  0x40   : > { %298 = vst [vmem:[#allocation3 + $0x70] sm:$0xff] %v1195_v0 }
  0x41   : > { %299 = vst [vmem:[#allocation3 + $0x38] sm:$0xff] %v1195_v0 }
  0x42   : > { %300 = vst [vmem:[#allocation3 + $0x20] sm:$0xff] %v1195_v0 }
  0x43   : > { %301 = vst [vmem:[#allocation3 + $0x78] sm:$0xff] %v1195_v0 }
  0x44   : > { %302 = vst [vmem:[#allocation3 + $0x18] sm:$0xff] %v1195_v0 }
  0x45   : > { %303 = vst [vmem:[#allocation3 + $0x58] sm:$0xff] %v1195_v0 }
  0x46   : > { %304 = vst [vmem:[#allocation3] sm:$0xff] %v1195_v0 }
  0x47   : > { %305 = vst [vmem:[#allocation3 + $0x8] sm:$0xff] %v1195_v0 }
  0x48   : > { %306 = vst [vmem:[#allocation3 + $0x60] sm:$0xff] %v1195_v0 }
  0x49   : > { %307 = vst [vmem:[#allocation3 + $0x50] sm:$0xff] %v1195_v0 }
  0x4a PF: > { %v944_v1 = vld [vmem:[%s1310_s13 + $0x38] sm:$0xff]  ;;  %v943_v2 = vld [vmem:[%s1310_s13 + $0x30] sm:$0xff]  ;;  %v942_v3 = vld [vmem:[%s1310_s13 + $0x28] sm:$0xff]  ;;  %p921_p0 = scmp.ge.s32.totalorder %s1182_s18, 1 }
  0x4b   : > { %436 = vmatpush.bf16.msra.mxu0 %v944_v1  ;;  %945 = vmatpush.bf16.msra.mxu1 %v944_v1  ;;  %v941_v4 = vld [vmem:[%s1310_s13 + $0x20] sm:$0xff]  ;;  %v940_v5 = vld [vmem:[%s1310_s13 + $0x18] sm:$0xff]  ;;  %v939_v6 = vld [vmem:[%s1310_s13 + $0x10] sm:$0xff] }
  0x4c   : > { %946 = vmatpush.bf16.msra.mxu2 %v944_v1  ;;  %947 = vmatpush.bf16.msra.mxu3 %v944_v1  ;;  %v938_v7 = vld [vmem:[%s1310_s13 + $0x8] sm:$0xff]  ;;  %v937_v8 = vld [vmem:[%s1310_s13] sm:$0xff]  ;;  %v931_v10 = vld [vmem:[%s1304_s12 + $0x10] sm:$0xff] }
  0x4d   : > { %v929_v9 = vld [vmem:[%s1304_s12] sm:$0xff]  ;;  %v935_v12 = vld [vmem:[%s1304_s12 + $0x30] sm:$0xff]  ;;  %v930_v13 = vld [vmem:[%s1304_s12 + $0x8] sm:$0xff] }
  0x4e   : > { %v933_v11 = vld [vmem:[%s1304_s12 + $0x20] sm:$0xff]  ;;  %v932_v14 = vld [vmem:[%s1304_s12 + $0x18] sm:$0xff]  ;;  %v934_v15 = vld [vmem:[%s1304_s12 + $0x28] sm:$0xff] }
  0x4f   : > { %437 = vmatpush.bf16.msra.mxu0 %v943_v2  ;;  %948 = vmatpush.bf16.msra.mxu1 %v943_v2  ;;  %v936_v16 = vld [vmem:[%s1304_s12 + $0x38] sm:$0xff] }
  0x50   : > { %949 = vmatpush.bf16.msra.mxu2 %v943_v2  ;;  %950 = vmatpush.bf16.msra.mxu3 %v943_v2 }
  0x53   : > { %438 = vmatpush.bf16.msra.mxu0 %v942_v3  ;;  %951 = vmatpush.bf16.msra.mxu1 %v942_v3 }
  0x54   : > { %952 = vmatpush.bf16.msra.mxu2 %v942_v3  ;;  %953 = vmatpush.bf16.msra.mxu3 %v942_v3 }
  0x57   : > { %439 = vmatpush.bf16.msra.mxu0 %v941_v4  ;;  %954 = vmatpush.bf16.msra.mxu1 %v941_v4 }
  0x58   : > { %955 = vmatpush.bf16.msra.mxu2 %v941_v4  ;;  %956 = vmatpush.bf16.msra.mxu3 %v941_v4 }
  0x5b   : > { %440 = vmatpush.bf16.msra.mxu0 %v940_v5  ;;  %957 = vmatpush.bf16.msra.mxu1 %v940_v5 }
  0x5c   : > { %958 = vmatpush.bf16.msra.mxu2 %v940_v5  ;;  %959 = vmatpush.bf16.msra.mxu3 %v940_v5 }
  0x5f   : > { %441 = vmatpush.bf16.msra.mxu0 %v939_v6  ;;  %960 = vmatpush.bf16.msra.mxu1 %v939_v6 }
  0x60   : > { %961 = vmatpush.bf16.msra.mxu2 %v939_v6  ;;  %962 = vmatpush.bf16.msra.mxu3 %v939_v6 }
  0x63   : > { %442 = vmatpush.bf16.msra.mxu0 %v938_v7  ;;  %963 = vmatpush.bf16.msra.mxu1 %v938_v7 }
  0x64   : > { %964 = vmatpush.bf16.msra.mxu2 %v938_v7  ;;  %965 = vmatpush.bf16.msra.mxu3 %v938_v7 }
  0x67   : > { %443 = vmatpush.bf16.msra.mxu0 %v937_v8  ;;  %966 = vmatpush.bf16.msra.mxu1 %v937_v8 }
  0x68   : > { %967 = vmatpush.bf16.msra.mxu2 %v937_v8  ;;  %968 = vmatpush.bf16.msra.mxu3 %v937_v8 }
  0x6a   : > { %444 = vmatmul.bf16.vlgmr.msra.gmra.mxu0 %v929_v9  ;;  %454 = vmatmul.bf16.vlgmr.msra.gmra.mxu1 %v931_v10 }
  0x6b   : > { %464 = vmatmul.bf16.vlgmr.msra.gmra.mxu2 %v933_v11  ;;  %474 = vmatmul.bf16.vlgmr.msra.gmra.mxu3 %v935_v12 }
  0x7a   : > { %449 = vmatmul.bf16.gmra.mxu0 %v930_v13  ;;  %459 = vmatmul.bf16.gmra.mxu1 %v932_v14 }
  0x7b   : > { %469 = vmatmul.bf16.gmra.mxu2 %v934_v15  ;;  %479 = vmatmul.bf16.gmra.mxu3 %v936_v16 }
  0xe7   : > { %v1333_v17 = vpop.f32.mrf.mxu0  ;;  %v1335_v18 = vpop.f32.mrf.mxu1 }
  0xee   : > { %v1337_v19 = vpop.f32.mrf.mxu2  ;;  %v1339_v20 = vpop.f32.mrf.mxu3 }
  0xef   : > { %v1341_v21 = vpop.f32.mrf.mxu0  ;;  %v1343_v22 = vpop.f32.mrf.mxu1 }
  0xf6   : > { %v1345_v23 = vpop.f32.mrf.mxu2  ;;  %v1347_v24 = vpop.f32.mrf.mxu3 }
  0xf7   : > { %v1349_v25 = vpop.f32.mrf.mxu0  ;;  %v1351_v26 = vpop.f32.mrf.mxu1 }
  0xfe   : > { %v1353_v27 = vpop.f32.mrf.mxu2  ;;  %v1355_v28 = vpop.f32.mrf.mxu3 }
  0xff   : > { %v1357_v29 = vpop.f32.mrf.mxu0  ;;  %v1359_v30 = vpop.f32.mrf.mxu1 }
 0x102   : > { %488 = sbr.rel (%p921_p0) target bundleno = 282 (0x11a), region = 52 }
 0x106   : > { %v1361_v31 = vpop.f32.mrf.mxu2  ;;  %v1363_v32 = vpop.f32.mrf.mxu3 }
 0x107   : > { %v489_v33 = vld [vmem:[#allocation2 + $0x30] sm:$0xff]  ;;  %v490_v34 = vld [vmem:[#allocation2] sm:$0xff]  ;;  %v491_v35 = vld [vmem:[#allocation2 + $0x58] sm:$0xff] }
 0x108   : > { %v505_v36 = vadd.f32 %v489_v33, %v1333_v17  ;;  %v506_v37 = vadd.f32 %v490_v34, %v1341_v21  ;;  %v507_v38 = vadd.f32 %v491_v35, %v1349_v25  ;;  %v492_v39 = vld [vmem:[#allocation2 + $0x18] sm:$0xff]  ;;  %v493_v40 = vld [vmem:[#allocation2 + $0x50] sm:$0xff]  ;;  %v494_v41 = vld [vmem:[#allocation2 + $0x68] sm:$0xff] }
 0x109   : > { %v508_v42 = vadd.f32 %v492_v39, %v1357_v29  ;;  %v495_v43 = vld [vmem:[#allocation2 + $0x8] sm:$0xff]  ;;  %v509_v44 = vadd.f32 %v493_v40, %v1335_v18  ;;  %v510_v46 = vadd.f32 %v494_v41, %v1343_v22  ;;  %v497_v47 = vld [vmem:[#allocation2 + $0x40] sm:$0xff]  ;;  %v499_v51 = vld [vmem:[#allocation2 + $0x10] sm:$0xff] }
 0x10a   : > { %521 = vst [vmem:[#allocation2 + $0x30] sm:$0xff] %v505_v36  ;;  %v496_v45 = vld [vmem:[#allocation2 + $0x48] sm:$0xff]  ;;  %v511_v48 = vadd.f32 %v495_v43, %v1351_v26  ;;  %v498_v49 = vld [vmem:[#allocation2 + $0x20] sm:$0xff]  ;;  %v513_v52 = vadd.f32 %v497_v47, %v1337_v19  ;;  %v500_v53 = vld [vmem:[#allocation2 + $0x38] sm:$0xff]  ;;  %v515_v56 = vadd.f32 %v499_v51, %v1353_v27 }
 0x10b   : > { %522 = vst [vmem:[#allocation2] sm:$0xff] %v506_v37  ;;  %v512_v50 = vadd.f32 %v496_v45, %v1359_v30  ;;  %v514_v54 = vadd.f32 %v498_v49, %v1345_v23  ;;  %v501_v55 = vld [vmem:[#allocation2 + $0x60] sm:$0xff]  ;;  %v502_v57 = vld [vmem:[#allocation2 + $0x70] sm:$0xff]  ;;  %v516_v58 = vadd.f32 %v500_v53, %v1361_v31  ;;  %v503_v59 = vld [vmem:[#allocation2 + $0x78] sm:$0xff] }
 0x10c   : > { %523 = vst [vmem:[#allocation2 + $0x58] sm:$0xff] %v507_v38  ;;  %v517_v60 = vadd.f32 %v501_v55, %v1339_v20  ;;  %v504_v61 = vld [vmem:[#allocation2 + $0x28] sm:$0xff]  ;;  %v518_v62 = vadd.f32 %v502_v57, %v1347_v24  ;;  %v519_v63 = vadd.f32 %v503_v59, %v1355_v28 }
 0x10d   : > { %524 = vst [vmem:[#allocation2 + $0x18] sm:$0xff] %v508_v42  ;;  %v520_v0 = vadd.f32 %v504_v61, %v1363_v32 }
 0x10e   : > { %525 = vst [vmem:[#allocation2 + $0x50] sm:$0xff] %v509_v44 }
 0x10f   : > { %526 = vst [vmem:[#allocation2 + $0x68] sm:$0xff] %v510_v46 }
 0x110   : > { %527 = vst [vmem:[#allocation2 + $0x8] sm:$0xff] %v511_v48 }
 0x111   : > { %528 = vst [vmem:[#allocation2 + $0x48] sm:$0xff] %v512_v50 }
 0x112   : > { %529 = vst [vmem:[#allocation2 + $0x40] sm:$0xff] %v513_v52 }
 0x113   : > { %530 = vst [vmem:[#allocation2 + $0x20] sm:$0xff] %v514_v54 }
 0x114   : > { %531 = vst [vmem:[#allocation2 + $0x10] sm:$0xff] %v515_v56 }
 0x115   : > { %532 = vst [vmem:[#allocation2 + $0x38] sm:$0xff] %v516_v58 }
 0x116   : > { %533 = vst [vmem:[#allocation2 + $0x60] sm:$0xff] %v517_v60 }
 0x117   : > { %534 = vst [vmem:[#allocation2 + $0x70] sm:$0xff] %v518_v62 }
 0x118   : > { %535 = vst [vmem:[#allocation2 + $0x78] sm:$0xff] %v519_v63 }
 0x119   : > { %536 = vst [vmem:[#allocation2 + $0x28] sm:$0xff] %v520_v0 }
 0x11a PF: > { %p922_p1 = scmp.lt.s32.totalorder %s1182_s18, 1 }
 0x11c   : > { %540 = sbr.rel (%p922_p1) target bundleno = 308 (0x134), region = 56 }
 0x121   : > { %v541_v1 = vld [vmem:[#allocation3 + $0x28] sm:$0xff]  ;;  %v543_v3 = vld [vmem:[#allocation3 + $0x10] sm:$0xff]  ;;  %v544_v7 = vld [vmem:[#allocation3 + $0x40] sm:$0xff] }
 0x122   : > { %v542_v2 = vld [vmem:[#allocation3 + $0x68] sm:$0xff]  ;;  %v557_v4 = vadd.f32 %v541_v1, %v1333_v17  ;;  %v559_v6 = vadd.f32 %v543_v3, %v1349_v25  ;;  %v546_v9 = vld [vmem:[#allocation3 + $0x30] sm:$0xff]  ;;  %v560_v10 = vadd.f32 %v544_v7, %v1357_v29  ;;  %v548_v13 = vld [vmem:[#allocation3 + $0x38] sm:$0xff] }
 0x123   : > { %v558_v5 = vadd.f32 %v542_v2, %v1341_v21  ;;  %v545_v8 = vld [vmem:[#allocation3 + $0x48] sm:$0xff]  ;;  %v547_v11 = vld [vmem:[#allocation3 + $0x70] sm:$0xff]  ;;  %v562_v14 = vadd.f32 %v546_v9, %v1343_v22  ;;  %v549_v15 = vld [vmem:[#allocation3 + $0x20] sm:$0xff]  ;;  %v564_v21 = vadd.f32 %v548_v13, %v1359_v30 }
 0x124   : > { %573 = vst [vmem:[#allocation3 + $0x28] sm:$0xff] %v557_v4  ;;  %v561_v12 = vadd.f32 %v545_v8, %v1335_v18  ;;  %v563_v16 = vadd.f32 %v547_v11, %v1351_v26  ;;  %v550_v17 = vld [vmem:[#allocation3 + $0x78] sm:$0xff]  ;;  %v565_v29 = vadd.f32 %v549_v15, %v1337_v19  ;;  %v553_v34 = vld [vmem:[#allocation3] sm:$0xff]  ;;  %v554_v35 = vld [vmem:[#allocation3 + $0x8] sm:$0xff] }
 0x125   : > { %574 = vst [vmem:[#allocation3 + $0x68] sm:$0xff] %v558_v5  ;;  %v551_v25 = vld [vmem:[#allocation3 + $0x18] sm:$0xff]  ;;  %v566_v18 = vadd.f32 %v550_v17, %v1345_v23  ;;  %v555_v36 = vld [vmem:[#allocation3 + $0x60] sm:$0xff]  ;;  %v569_v30 = vadd.f32 %v553_v34, %v1339_v20  ;;  %v556_v37 = vld [vmem:[#allocation3 + $0x50] sm:$0xff]  ;;  %v570_v19 = vadd.f32 %v554_v35, %v1347_v24 }
 0x126   : > { %575 = vst [vmem:[#allocation3 + $0x10] sm:$0xff] %v559_v6  ;;  %v552_v33 = vld [vmem:[#allocation3 + $0x58] sm:$0xff]  ;;  %v567_v22 = vadd.f32 %v551_v25, %v1353_v27  ;;  %v571_v38 = vadd.f32 %v555_v36, %v1355_v28  ;;  %v572_v23 = vadd.f32 %v556_v37, %v1363_v32 }
 0x127   : > { %576 = vst [vmem:[#allocation3 + $0x40] sm:$0xff] %v560_v10  ;;  %v568_v26 = vadd.f32 %v552_v33, %v1361_v31 }
 0x128   : > { %577 = vst [vmem:[#allocation3 + $0x48] sm:$0xff] %v561_v12 }
 0x129   : > { %578 = vst [vmem:[#allocation3 + $0x30] sm:$0xff] %v562_v14 }
 0x12a   : > { %579 = vst [vmem:[#allocation3 + $0x70] sm:$0xff] %v563_v16 }
 0x12b   : > { %580 = vst [vmem:[#allocation3 + $0x38] sm:$0xff] %v564_v21 }
 0x12c   : > { %581 = vst [vmem:[#allocation3 + $0x20] sm:$0xff] %v565_v29 }
 0x12d   : > { %582 = vst [vmem:[#allocation3 + $0x78] sm:$0xff] %v566_v18 }
 0x12e   : > { %583 = vst [vmem:[#allocation3 + $0x18] sm:$0xff] %v567_v22 }
 0x12f   : > { %584 = vst [vmem:[#allocation3 + $0x58] sm:$0xff] %v568_v26 }
 0x130   : > { %585 = vst [vmem:[#allocation3] sm:$0xff] %v569_v30 }
 0x131   : > { %586 = vst [vmem:[#allocation3 + $0x8] sm:$0xff] %v570_v19 }
 0x132   : > { %587 = vst [vmem:[#allocation3 + $0x60] sm:$0xff] %v571_v38 }
 0x133   : > { %588 = vst [vmem:[#allocation3 + $0x50] sm:$0xff] %v572_v23 }
 0x134 PF: > { %p923_p2 = scmp.ne.s32.totalorder %s1182_s18, 1 }
 0x136   : > { %592 = sbr.rel (%p923_p2) target bundleno = 347 (0x15b), region = 60 }
 0x13b   : > { %v593_v27 = vld [vmem:[#allocation2 + $0x30] sm:$0xff]  ;;  %v1403_v20 = vld [vmem:[%s1467_s2] ss:$0 sm:$0xff]  ;;  %v645_v24 = vld [vmem:[#allocation3 + $0x28] sm:$0xff] }
 0x13c   : > { %v1408_v28 = vld [vmem:[%s1468_s3] ss:$0 sm:$0xff]  ;;  %v613_v31 = vadd.f32 %v1403_v20, %v593_v27  ;;  %v646_v39 = vld [vmem:[#allocation3 + $0x68] sm:$0xff]  ;;  %v595_v40 = vld [vmem:[#allocation2 + $0x58] sm:$0xff] }
 0x13d   : > { %v594_v32 = vld [vmem:[#allocation2] sm:$0xff]  ;;  %v665_v41 = vadd.f32 %v1408_v28, %v645_v24  ;;  %v666_v43 = vadd.f32 %v1408_v28, %v646_v39  ;;  %v615_v44 = vadd.f32 %v1403_v20, %v595_v40  ;;  %v647_v45 = vld [vmem:[#allocation3 + $0x10] sm:$0xff]  ;;  %v596_v46 = vld [vmem:[#allocation2 + $0x18] sm:$0xff] }
 0x13e   : > { %v614_v42 = vadd.f32 %v1403_v20, %v594_v32  ;;  %v648_v47 = vld [vmem:[#allocation3 + $0x40] sm:$0xff]  ;;  %v629_v48 = vmax.f32 %v613_v31, 0.0  ;;  %v667_v49 = vadd.f32 %v1408_v28, %v647_v45  ;;  %v616_v50 = vadd.f32 %v1403_v20, %v596_v46  ;;  %v597_v52 = vld [vmem:[#allocation2 + $0x50] sm:$0xff]  ;;  %v649_v53 = vld [vmem:[#allocation3 + $0x48] sm:$0xff] }
 0x13f   : > { %v668_v51 = vadd.f32 %v1408_v28, %v648_v47  ;;  %v598_v54 = vld [vmem:[#allocation2 + $0x68] sm:$0xff]  ;;  %v681_v55 = vmax.f32 %v665_v41, 0.0  ;;  %v682_v57 = vmax.f32 %v666_v43, 0.0  ;;  %v631_v58 = vmax.f32 %v615_v44, 0.0  ;;  %v650_v59 = vld [vmem:[#allocation3 + $0x30] sm:$0xff]  ;;  %v652_v11 = vld [vmem:[#allocation3 + $0x38] sm:$0xff] }
 0x140   : > { %v630_v56 = vmax.f32 %v614_v42, 0.0  ;;  %v683_v60 = vmax.f32 %v667_v49, 0.0  ;;  %v632_v61 = vmax.f32 %v616_v50, 0.0  ;;  %v617_v63 = vadd.f32 %v1403_v20, %v597_v52  ;;  %v599_v4 = vld [vmem:[#allocation2 + $0x8] sm:$0xff]  ;;  %v651_v9 = vld [vmem:[#allocation3 + $0x70] sm:$0xff]  ;;  %v601_v16 = vld [vmem:[#allocation2 + $0x40] sm:$0xff] }
 0x141   : > { %v684_v62 = vmax.f32 %v668_v51, 0.0  ;;  %v697_v0 = vadd.f32 %v681_v55, %v629_v48  ;;  %v669_v2 = vadd.f32 %v1408_v28, %v649_v53  ;;  %v618_v3 = vadd.f32 %v1403_v20, %v598_v54  ;;  %v600_v10 = vld [vmem:[#allocation2 + $0x48] sm:$0xff]  ;;  %v653_v17 = vld [vmem:[#allocation3 + $0x20] sm:$0xff]  ;;  %v654_v38 = vld [vmem:[#allocation3 + $0x78] sm:$0xff] }
 0x142   : > { %v698_v1 = vadd.f32 %v682_v57, %v630_v56  ;;  %v699_v5 = vadd.f32 %v683_v60, %v631_v58  ;;  %v633_v7 = vmax.f32 %v617_v63, 0.0  ;;  %v670_v8 = vadd.f32 %v1408_v28, %v650_v59  ;;  %v602_v26 = vld [vmem:[#allocation2 + $0x20] sm:$0xff]  ;;  %v603_v23 = vld [vmem:[#allocation2 + $0x10] sm:$0xff]  ;;  %v655_v27 = vld [vmem:[#allocation3 + $0x18] sm:$0xff] }
 0x143   : > { %v700_v6 = vadd.f32 %v684_v62, %v632_v61  ;;  %v713_v12 = vmul.f32 0.5, %v697_v0  ;;  %v685_v14 = vmax.f32 %v669_v2, 0.0  ;;  %v634_v15 = vmax.f32 %v618_v3, 0.0  ;;  %v604_v40 = vld [vmem:[#allocation2 + $0x38] sm:$0xff]  ;;  %v605_v54 = vld [vmem:[#allocation2 + $0x60] sm:$0xff]  ;;  %v606_v56 = vld [vmem:[#allocation2 + $0x70] sm:$0xff] }
 0x144   : > { %v714_v13 = vmul.f32 0.5, %v698_v1  ;;  %v715_v21 = vmul.f32 0.5, %v699_v5  ;;  %v686_v29 = vmax.f32 %v670_v8, 0.0  ;;  %v619_v33 = vadd.f32 %v1403_v20, %v599_v4  ;;  %v656_v49 = vld [vmem:[#allocation3 + $0x58] sm:$0xff]  ;;  %v657_v55 = vld [vmem:[#allocation3] sm:$0xff]  ;;  %v658_v61 = vld [vmem:[#allocation3 + $0x8] sm:$0xff] }
 0x145   : > { %v716_v25 = vmul.f32 0.5, %v700_v6  ;;  %729 = vst [vmem:[#allocation9] sm:$0xff] %v713_v12  ;;  %v701_v18 = vadd.f32 %v685_v14, %v633_v7  ;;  %v671_v34 = vadd.f32 %v1408_v28, %v651_v9  ;;  %v620_v22 = vadd.f32 %v1403_v20, %v600_v10  ;;  %v607_v62 = vld [vmem:[#allocation2 + $0x78] sm:$0xff]  ;;  %v608_v12 = vld [vmem:[#allocation2 + $0x28] sm:$0xff] }
 0x146   : > { %v672_v35 = vadd.f32 %v1408_v28, %v652_v11  ;;  %730 = vst [vmem:[#allocation9 + $0x8] sm:$0xff] %v714_v13  ;;  %v702_v36 = vadd.f32 %v686_v29, %v634_v15  ;;  %v635_v30 = vmax.f32 %v619_v33, 0.0  ;;  %v621_v37 = vadd.f32 %v1403_v20, %v601_v16  ;;  %v659_v11 = vld [vmem:[#allocation3 + $0x60] sm:$0xff]  ;;  %v660_v13 = vld [vmem:[#allocation3 + $0x50] sm:$0xff] }
 0x147   : > { %v673_v19 = vadd.f32 %v1408_v28, %v653_v17  ;;  %731 = vst [vmem:[#allocation9 + $0x10] sm:$0xff] %v715_v21  ;;  %v717_v24 = vmul.f32 0.5, %v701_v18  ;;  %v687_v31 = vmax.f32 %v671_v34, 0.0  ;;  %v636_v32 = vmax.f32 %v620_v22, 0.0 }
 0x148   : > { %v688_v39 = vmax.f32 %v672_v35, 0.0  ;;  %732 = vst [vmem:[#allocation9 + $0x18] sm:$0xff] %v716_v25  ;;  %v718_v41 = vmul.f32 0.5, %v702_v36  ;;  %v637_v42 = vmax.f32 %v621_v37, 0.0  ;;  %v622_v44 = vadd.f32 %v1403_v20, %v602_v26 }
 0x149   : > { %v689_v43 = vmax.f32 %v673_v19, 0.0  ;;  %733 = vst [vmem:[#allocation9 + $0x20] sm:$0xff] %v717_v24  ;;  %v703_v45 = vadd.f32 %v687_v31, %v635_v30  ;;  %v674_v47 = vadd.f32 %v1408_v28, %v654_v38  ;;  %v623_v48 = vadd.f32 %v1403_v20, %v603_v23 }
 0x14a   : > { %v704_v46 = vadd.f32 %v688_v39, %v636_v32  ;;  %734 = vst [vmem:[#allocation9 + $0x28] sm:$0xff] %v718_v41  ;;  %v638_v51 = vmax.f32 %v622_v44, 0.0  ;;  %v675_v52 = vadd.f32 %v1408_v28, %v655_v27  ;;  %v624_v53 = vadd.f32 %v1403_v20, %v604_v40 }
 0x14b   : > { %v705_v50 = vadd.f32 %v689_v43, %v637_v42  ;;  %v719_v57 = vmul.f32 0.5, %v703_v45  ;;  %v690_v59 = vmax.f32 %v674_v47, 0.0  ;;  %v639_v60 = vmax.f32 %v623_v48, 0.0 }
 0x14c   : > { %v720_v58 = vmul.f32 0.5, %v704_v46  ;;  %v691_v0 = vmax.f32 %v675_v52, 0.0  ;;  %v640_v1 = vmax.f32 %v624_v53, 0.0  ;;  %v676_v2 = vadd.f32 %v1408_v28, %v656_v49 }
 0x14d   : > { %v721_v63 = vmul.f32 0.5, %v705_v50  ;;  %735 = vst [vmem:[#allocation9 + $0x30] sm:$0xff] %v719_v57  ;;  %v706_v3 = vadd.f32 %v690_v59, %v638_v51  ;;  %v625_v4 = vadd.f32 %v1403_v20, %v605_v54  ;;  %v677_v5 = vadd.f32 %v1408_v28, %v657_v55 }
 0x14e   : > { %v626_v6 = vadd.f32 %v1403_v20, %v606_v56  ;;  %736 = vst [vmem:[#allocation9 + $0x38] sm:$0xff] %v720_v58  ;;  %v707_v7 = vadd.f32 %v691_v0, %v639_v60  ;;  %v692_v8 = vmax.f32 %v676_v2, 0.0  ;;  %v678_v9 = vadd.f32 %v1408_v28, %v658_v61 }
 0x14f   : > { %v627_v10 = vadd.f32 %v1403_v20, %v607_v62  ;;  %737 = vst [vmem:[#allocation9 + $0x40] sm:$0xff] %v721_v63  ;;  %v722_v14 = vmul.f32 0.5, %v706_v3  ;;  %v641_v15 = vmax.f32 %v625_v4, 0.0  ;;  %v693_v16 = vmax.f32 %v677_v5, 0.0 }
 0x150   : > { %v642_v17 = vmax.f32 %v626_v6, 0.0  ;;  %v723_v21 = vmul.f32 0.5, %v707_v7  ;;  %v708_v25 = vadd.f32 %v692_v8, %v640_v1  ;;  %v694_v29 = vmax.f32 %v678_v9, 0.0 }
 0x151   : > { %v643_v33 = vmax.f32 %v627_v10, 0.0  ;;  %738 = vst [vmem:[#allocation9 + $0x48] sm:$0xff] %v722_v14  ;;  %v709_v18 = vadd.f32 %v693_v16, %v641_v15  ;;  %v679_v34 = vadd.f32 %v1408_v28, %v659_v11  ;;  %v628_v22 = vadd.f32 %v1403_v20, %v608_v12 }
 0x152   : > { %v680_v35 = vadd.f32 %v1408_v28, %v660_v13  ;;  %739 = vst [vmem:[#allocation9 + $0x50] sm:$0xff] %v723_v21  ;;  %v724_v26 = vmul.f32 0.5, %v708_v25  ;;  %v710_v36 = vadd.f32 %v694_v29, %v642_v17 }
 0x153   : > { %v725_v30 = vmul.f32 0.5, %v709_v18  ;;  %v695_v37 = vmax.f32 %v679_v34, 0.0  ;;  %v644_v19 = vmax.f32 %v628_v22, 0.0 }
 0x154   : > { %v696_v38 = vmax.f32 %v680_v35, 0.0  ;;  %740 = vst [vmem:[#allocation9 + $0x58] sm:$0xff] %v724_v26  ;;  %v726_v23 = vmul.f32 0.5, %v710_v36 }
 0x155   : > { %741 = vst [vmem:[#allocation9 + $0x60] sm:$0xff] %v725_v30  ;;  %v711_v27 = vadd.f32 %v695_v37, %v643_v33 }
 0x156   : > { %v712_v24 = vadd.f32 %v696_v38, %v644_v19  ;;  %742 = vst [vmem:[#allocation9 + $0x68] sm:$0xff] %v726_v23 }
 0x157   : > { %v727_v31 = vmul.f32 0.5, %v711_v27 }
 0x158   : > { %v728_v32 = vmul.f32 0.5, %v712_v24 }
 0x159   : > { %743 = vst [vmem:[#allocation9 + $0x70] sm:$0xff] %v727_v31 }
 0x15a   : > { %744 = vst [vmem:[#allocation9 + $0x78] sm:$0xff] %v728_v32 }
 0x15b PF: > { %s1474_s18 = sadd.s32 4294967295, %s1190_s20   ;;  %s755_s23 = sshll.u32 %s1469_s4, 4  ;;  %s756_s23 = int_to_ptr.hbm [resolvable:$true] %s755_s23 }
 0x15c   : > { %p985_p3 = scmp.eq.s32.totalorder %s1474_s18, 1  ;;  %s1196_s25 = smov [#allocation9]  }
 0x15d   : > { %s753_s29 = sshll.u32 %s1196_s25, 4  ;;  %s1197_s24 = smov 128   ;;  %s754_s29 = int_to_ptr.vmem [resolvable:$true] %s753_s29 }
 0x15e   : > { %s1198_s5 = smov 8  }
 0x15f   : > { %974 = dma.vmem_to_hbm [thread:$0]  (%p985_p3), %s754_s29, 2048, %s756_s23, [#allocation6], %s1197_s24, %s1197_s24, %s1198_s5  }
 0x160   : > { %1165 = dma.done.wait (%p985_p3), [#allocation6], 2048  }
 0x161   : > { %1167 = vsyncadd (%p985_p3), [#allocation6], 4294965248 }
 0x162 PF: > { %s21_s20 = sadd.s32 1, %s1190_s20   ;;  %s1475_s15 = smov %s1174_s16 }
 0x163   : > { %p18_p4 = scmp.ge.s32.totalorder %s21_s20, 4   ;;  %s1476_s16 = smov %s1178_s17 }
 0x164   : > { %s1477_s17 = smov %s1275_s27  ;;  %s1478_s18 = smov %s1186_s19 }
 0x165   : > { %s1479_s19 = smov %s1481_s22  ;;  %20 = sbr.rel (!%p18_p4) target bundleno = 7 (0x7), region = 103 }
 0x16a   :  { %772 = vsyncpa [#allocation5], 1 }
 0x16b   :  { %774 = vsyncpa [#allocation5 + $0x1], 1 }
 0x16c   :  { %775 = vsyncpa [#allocation8], 1 }
 0x16d   :  { %777 = vsyncpa [#allocation8 + $0x1], 1 }
 0x16e   :  { %778 = vsyncpa [#allocation6], 1 }
 0x16f   :  { %780 = vsyncpa [#allocation6 + $0x1], 1 }

</bundles_post_ra>
